<compile_context>
chip_gen: v6e
topology: v6e:2x2x1
jax: 0.10.0
libtpu: 0.0.40
codegen_flags: <defaults>
</compile_context>

<pallas_src>
import functools
import math

import jax
import jax.numpy as jnp
from jax.experimental import pallas as pl
from jax.experimental.pallas import tpu as pltpu


def _round_up(x, m):
    return (x + m - 1) // m * m


def _cdiv(a, b):
    return (a + b - 1) // b


def _ls_kl_row_kernel(out_ref, tgt_ref, loss_ref, *, sv, conf, sv_logsv,
                      conf_logconf, ignore_index, zero_col, v_valid, v_ragged):
    """Per-row smoothed-KL via the algebraic rewrite (see module docstring)."""
    out = out_ref[...].astype(jnp.float32)          # (tb, V)  (bf16 upcast in-kernel)
    tgt = tgt_ref[...]                              # (tb, 1)  int32
    tb = out.shape[0]

    col = jax.lax.broadcasted_iota(jnp.int32, (tb, v_valid), 1)
    if v_ragged:
        # Physical lane padding of a full-dim (non-128-multiple) block is
        # unspecified; the iota's padding lanes hold their physical lane index
        # (>= v_valid), so this select zeroes them before the row reductions.
        out = jnp.where(col < v_valid, out, 0.0)

    # Heavy per-element work (~4-5 VALU ops/elem): plain row sum and a one-hot
    # extract of out[i, tgt[i]] (compare + select + lane-fold sum).
    row_sum = jnp.sum(out, axis=1, keepdims=True)                               # (tb,1)
    out_tgt = jnp.sum(jnp.where(col == tgt, out, 0.0), axis=1, keepdims=True)   # (tb,1)
    out_zc = out[:, zero_col:zero_col + 1]                                      # (tb,1)

    c0 = (v_valid - 1) * sv_logsv + conf_logconf
    row_loss = (c0
                - sv * (row_sum - out_zc)
                - conf * out_tgt
                - jnp.where(tgt == zero_col, 0.0, sv_logsv - sv * out_tgt))
    # Row masks after the lane fold: ignored rows (and the padded / garbage rows
    # of a partial last block, whose targets were padded with ignore_index)
    # contribute exactly 0.  jnp.where is a select, so garbage NaNs don't leak.
    row_loss = jnp.where(tgt == ignore_index, 0.0, row_loss)
    loss_ref[...] = row_loss


def label_smoothing_loss(output, target, *, label_smoothing, tgt_vocab_size,
                         ignore_index=-100, block_b=None):
    """output: (B, V) log-probs (f32 or bf16); target: (B,) int. Returns scalar f32."""
    assert 0.0 < label_smoothing <= 1.0
    B, V = output.shape
    assert V == tgt_vocab_size and V > 2

    if output.dtype not in (jnp.float32, jnp.bfloat16):
        output = output.astype(jnp.float32)   # bf16 stays bf16: no HBM-doubling cast
    target = target.astype(jnp.int32)

    sv = float(label_smoothing) / (tgt_vocab_size - 2)
    conf = 1.0 - float(label_smoothing)
    sv_logsv = sv * math.log(sv) if sv > 0.0 else 0.0
    conf_logconf = conf * math.log(conf) if conf > 0.0 else 0.0
    # PyTorch `one_hot[ignore_index] = 0` wraps negative indices.
    zero_col = ignore_index if ignore_index >= 0 else tgt_vocab_size + ignore_index
    assert 0 <= zero_col < V, "ignore_index must address a valid column"

    # Sub-sublane batch: pad to 8 rows (at most 7 tiny rows; negligible copy).
    if B < 8:
        output = jnp.pad(output, ((0, 8 - B), (0, 0)))
        target = jnp.pad(target, (0, 8 - B), constant_values=ignore_index)
        B = 8

    itemsize = jnp.dtype(output.dtype).itemsize
    V_phys = _round_up(V, 128)            # physical lane width of one row in VMEM

    try:
        vmem_cap = int(getattr(pltpu.get_tpu_info(), "vmem_capacity_bytes", 64 << 20))
    except Exception:
        vmem_cap = 64 << 20               # conservative (v7x-sized) fallback

    # Per-row peak-VMEM estimate for a grid step: double-buffered input row +
    # ~4 tile-sized f32/i32 vector intermediates (cast value, lane iota, target
    # mask / masked copy) Mosaic may materialize + lane-padded (tb,1) tgt/out tiles.
    per_row_peak = V_phys * (2 * itemsize + 4 * 4) + 4 * 128 * 4
    if block_b is None:
        rows_vmem = int(0.75 * vmem_cap) // per_row_peak
        rows_tile = (16 << 20) // (V_phys * itemsize)   # >16 MiB/step buys nothing
        rows = max(8, min(rows_vmem, rows_tile, _round_up(B, 8)))
        rows = (rows // 8) * 8
        # Balance blocks across the grid, never exceeding the row count; the last
        # block may still be partial (its garbage rows are masked in-kernel).
        nb = _cdiv(B, rows)
        block_b = _round_up(_cdiv(B, nb), 8)
        block_b = max(8, min(block_b, rows, (B // 8) * 8))
    assert block_b % 8 == 0 and 8 <= block_b <= B

    num_blocks = _cdiv(B, block_b)
    B_pad = num_blocks * block_b

    # Pad ONLY the tiny target vector; the big `output` tensor streams unpadded.
    if B_pad != B:
        target = jnp.pad(target, (0, B_pad - B), constant_values=ignore_index)
    target2d = target.reshape(B_pad, 1)

    kernel = functools.partial(
        _ls_kl_row_kernel,
        sv=sv, conf=conf, sv_logsv=sv_logsv, conf_logconf=conf_logconf,
        ignore_index=ignore_index, zero_col=zero_col,
        v_valid=V, v_ragged=(V % 128 != 0))

    cost = pl.CostEstimate(
        flops=6 * B * V, transcendentals=0,
        bytes_accessed=B * V * itemsize + 2 * B_pad * 4)

    vmem_peak = block_b * per_row_peak + (1 << 20)
    vmem_limit = min(max(vmem_peak + (2 << 20), 16 << 20), vmem_cap)
    vmem_limit = max(vmem_limit, vmem_peak)   # never clamp below what the tile needs

    partials = pl.pallas_call(
        kernel,
        out_shape=jax.ShapeDtypeStruct((B_pad, 1), jnp.float32),
        grid_spec=pltpu.PrefetchScalarGridSpec(
            num_scalar_prefetch=0,
            grid=(num_blocks,),
            in_specs=[
                # Full-V last block dim (exempt from the 128-divisibility rule):
                # no jnp.pad of the big tensor; row grid uses cdiv(B, block_b).
                pl.BlockSpec((block_b, V), lambda i: (i, 0)),
                pl.BlockSpec((block_b, 1), lambda i: (i, 0)),
            ],
            out_specs=pl.BlockSpec((block_b, 1), lambda i: (i, 0)),
        ),
        compiler_params=pltpu.CompilerParams(
            dimension_semantics=("parallel",),   # independent per-block rows
            vmem_limit_bytes=int(vmem_limit),
        ),
        cost_estimate=cost,
    )(output, target2d)

    return jnp.sum(partials)


def _reference(output, target, *, label_smoothing, tgt_vocab_size, ignore_index):
    """Pure-JAX reference mirroring the PyTorch forward."""
    B, V = output.shape
    smoothing_value = label_smoothing / (tgt_vocab_size - 2)
    confidence = 1.0 - label_smoothing
    zero_col = ignore_index if ignore_index >= 0 else V + ignore_index
    p = jnp.full((B, V), smoothing_value, dtype=jnp.float32)
    p = p.at[:, zero_col].set(0.0)
    p = p.at[jnp.arange(B), target].set(confidence)
    p = jnp.where((target == ignore_index)[:, None], 0.0, p)
    safe_p = jnp.where(p > 0.0, p, 1.0)
    return jnp.sum(jnp.where(p > 0.0, p * (jnp.log(safe_p) - output), 0.0))


if __name__ == "__main__":
    key = jax.random.PRNGKey(0)
    k1, k2, k3, k4, k5, k6 = jax.random.split(key, 6)

    # Case 1: padding-style ignore_index (valid class id); odd B and non-128 V
    # exercise the partial last row block and ragged-lane masking.
    B, V = 13, 500
    ignore_index = 0
    logits = jax.random.normal(k1, (B, V), dtype=jnp.float32)
    output = jax.nn.log_softmax(logits, axis=-1)
    target = jax.random.randint(k2, (B,), 0, V, dtype=jnp.int32)
    target = target.at[3].set(ignore_index)
    loss = label_smoothing_loss(output, target, label_smoothing=0.1,
                                tgt_vocab_size=V, ignore_index=ignore_index)
    loss = jax.block_until_ready(loss)
    ref = _reference(output, target, label_smoothing=0.1,
                     tgt_vocab_size=V, ignore_index=ignore_index)
    assert jnp.allclose(loss, ref, rtol=1e-4, atol=1e-2), (loss, ref)

    # Case 2: default ignore_index=-100 (wraps to column V-100); one target lands
    # on that column to exercise the scatter-after-zero ordering.
    B2, V2 = 16, 512
    ignore_index2 = -100
    logits2 = jax.random.normal(k3, (B2, V2), dtype=jnp.float32)
    output2 = jax.nn.log_softmax(logits2, axis=-1)
    target2 = jax.random.randint(k4, (B2,), 0, V2, dtype=jnp.int32)
    target2 = target2.at[5].set(V2 - 100)
    loss2 = label_smoothing_loss(output2, target2, label_smoothing=0.2,
                                 tgt_vocab_size=V2, ignore_index=ignore_index2)
    loss2 = jax.block_until_ready(loss2)
    ref2 = _reference(output2, target2, label_smoothing=0.2,
                      tgt_vocab_size=V2, ignore_index=ignore_index2)
    assert jnp.allclose(loss2, ref2, rtol=1e-4, atol=1e-2), (loss2, ref2)

    # Case 3: bf16 log-probs streamed without any wrapper-side f32 cast.
    B3, V3 = 24, 384
    ignore_index3 = 1
    logits3 = jax.random.normal(k5, (B3, V3), dtype=jnp.float32)
    output3 = jax.nn.log_softmax(logits3, axis=-1).astype(jnp.bfloat16)
    target3 = jax.random.randint(k6, (B3,), 0, V3, dtype=jnp.int32)
    target3 = target3.at[7].set(ignore_index3)
    loss3 = label_smoothing_loss(output3, target3, label_smoothing=0.15,
                                 tgt_vocab_size=V3, ignore_index=ignore_index3)
    loss3 = jax.block_until_ready(loss3)
    ref3 = _reference(output3.astype(jnp.float32), target3, label_smoothing=0.15,
                      tgt_vocab_size=V3, ignore_index=ignore_index3)
    assert jnp.allclose(loss3, ref3, rtol=1e-4, atol=1e-2), (loss3, ref3)

    print("KERNEL_OK")
</pallas_src>

<mosaic_0001>
module attributes {stable_mosaic.version = 11 : i64} {
  func.func @_ls_kl_row_kernel(%arg0: i32, %arg1: memref<8x500xf32, #tpu.memory_space<vmem>>, %arg2: memref<8x1xi32, #tpu.memory_space<vmem>>, %arg3: memref<8x1xf32, #tpu.memory_space<vmem>>) attributes {dimension_semantics = [#tpu.dimension_semantics<parallel>], iteration_bounds = array<i64: 2>, scalar_prefetch = 0 : i64, scratch_operands = 0 : i64, tpu.core_type = #tpu.core_type<tc>, window_params = [{transform_indices = @transform_0, window_bounds = array<i64: 8, 500>}, {transform_indices = @transform_1, window_bounds = array<i64: 8, 1>}, {transform_indices = @transform_2, window_bounds = array<i64: 8, 1>}]} {
    %c0 = arith.constant 0 : index
    %c0_0 = arith.constant 0 : index
    %0 = vector.load %arg1[%c0, %c0_0] : memref<8x500xf32, #tpu.memory_space<vmem>>, vector<8x500xf32>
    %c0_1 = arith.constant 0 : index
    %c0_2 = arith.constant 0 : index
    %1 = vector.load %arg2[%c0_1, %c0_2] : memref<8x1xi32, #tpu.memory_space<vmem>>, vector<8x1xi32>
    %2 = tpu.iota {dimensions = array<i32: 1>} : vector<8x500xi32>
    %c500_i32 = arith.constant 500 : i32
    %3 = vector.broadcast %c500_i32 : i32 to vector<8x500xi32>
    %4 = arith.cmpi slt, %2, %3 : vector<8x500xi32>
    %cst = arith.constant 0.000000e+00 : f32
    %5 = vector.broadcast %cst : f32 to vector<8x500xf32>
    %6 = arith.select %4, %0, %5 : vector<8x500xi1>, vector<8x500xf32>
    %cst_3 = arith.constant dense<0.000000e+00> : vector<8xf32>
    %7 = vector.multi_reduction <add>, %6, %cst_3 [1] : vector<8x500xf32> to vector<8xf32>
    %8 = vector.shape_cast %7 : vector<8xf32> to vector<8x1xf32>
    %9 = vector.broadcast %1 : vector<8x1xi32> to vector<8x500xi32>
    %10 = arith.cmpi eq, %2, %9 : vector<8x500xi32>
    %cst_4 = arith.constant 0.000000e+00 : f32
    %11 = vector.broadcast %cst_4 : f32 to vector<8x500xf32>
    %12 = arith.select %10, %6, %11 : vector<8x500xi1>, vector<8x500xf32>
    %cst_5 = arith.constant dense<0.000000e+00> : vector<8xf32>
    %13 = vector.multi_reduction <add>, %12, %cst_5 [1] : vector<8x500xf32> to vector<8xf32>
    %14 = vector.shape_cast %13 : vector<8xf32> to vector<8x1xf32>
    %15 = vector.extract_strided_slice %6 {offsets = [0, 0], sizes = [8, 1], strides = [1, 1]} : vector<8x500xf32> to vector<8x1xf32>
    %16 = arith.subf %8, %15 : vector<8x1xf32>
    %cst_6 = arith.constant 2.00803217E-4 : f32
    %17 = vector.broadcast %cst_6 : f32 to vector<8x1xf32>
    %18 = arith.mulf %17, %16 : vector<8x1xf32>
    %cst_7 = arith.constant -0.947852432 : f32
    %19 = vector.broadcast %cst_7 : f32 to vector<8x1xf32>
    %20 = arith.subf %19, %18 : vector<8x1xf32>
    %cst_8 = arith.constant 0.899999976 : f32
    %21 = vector.broadcast %cst_8 : f32 to vector<8x1xf32>
    %22 = arith.mulf %21, %14 : vector<8x1xf32>
    %23 = arith.subf %20, %22 : vector<8x1xf32>
    %c0_i32 = arith.constant 0 : i32
    %24 = vector.broadcast %c0_i32 : i32 to vector<8x1xi32>
    %25 = arith.cmpi eq, %1, %24 : vector<8x1xi32>
    %cst_9 = arith.constant 2.00803217E-4 : f32
    %26 = vector.broadcast %cst_9 : f32 to vector<8x1xf32>
    %27 = arith.mulf %26, %14 : vector<8x1xf32>
    %cst_10 = arith.constant -0.00170947495 : f32
    %28 = vector.broadcast %cst_10 : f32 to vector<8x1xf32>
    %29 = arith.subf %28, %27 : vector<8x1xf32>
    %cst_11 = arith.constant 0.000000e+00 : f32
    %30 = vector.broadcast %cst_11 : f32 to vector<8x1xf32>
    %31 = arith.select %25, %30, %29 : vector<8x1xi1>, vector<8x1xf32>
    %32 = arith.subf %23, %31 : vector<8x1xf32>
    %c0_i32_12 = arith.constant 0 : i32
    %33 = vector.broadcast %c0_i32_12 : i32 to vector<8x1xi32>
    %34 = arith.cmpi eq, %1, %33 : vector<8x1xi32>
    %cst_13 = arith.constant 0.000000e+00 : f32
    %35 = vector.broadcast %cst_13 : f32 to vector<8x1xf32>
    %36 = arith.select %34, %35, %32 : vector<8x1xi1>, vector<8x1xf32>
    %c0_14 = arith.constant 0 : index
    %c0_15 = arith.constant 0 : index
    %37 = vector.load %arg3[%c0_14, %c0_15] : memref<8x1xf32, #tpu.memory_space<vmem>>, vector<8x1xf32>
    tpu.vector_store %arg3[%c0_14, %c0_15], %36 {strides = array<i32>} : memref<8x1xf32, #tpu.memory_space<vmem>>, vector<8x1xf32>,
    return
  }
  func.func @transform_0(%arg0: i32) -> (i32, i32) {
    %c0_i32 = arith.constant 0 : i32
    %c0_i32_0 = arith.constant 0 : i32
    return %arg0, %c0_i32 : i32, i32
  }
  func.func @transform_1(%arg0: i32) -> (i32, i32) {
    %c0_i32 = arith.constant 0 : i32
    %c0_i32_0 = arith.constant 0 : i32
    return %arg0, %c0_i32 : i32, i32
  }
  func.func @transform_2(%arg0: i32) -> (i32, i32) {
    %c0_i32 = arith.constant 0 : i32
    %c0_i32_0 = arith.constant 0 : i32
    return %arg0, %c0_i32 : i32, i32
  }
}

</mosaic_0001>

<bundles_post_ra>
// kernel: tpu_custom_call.1
= control target key start
LH: loop header
LB: loop body
LE: loop exit
PB: predicated region body
PF: predicated region fallthrough
CT: control target
= control target key end

     0   :  { %7 = vsyncpa [#allocation3], 0  ;;  %s556_s0 = inlined_call_operand.hbm [shape: f32[13,500], index: 0, kind: input, shape index: {}]   ;;  %s557_s1 = inlined_call_operand.vmem [shape: s32[16,1], index: 1, kind: input, shape index: {}]   ;;  %s558_s2 = inlined_call_operand.vmem [shape: f32[16,1], index: 2, kind: output, shape index: {}]  }
   0x1   :  { %9 = vsyncpa [#allocation3 + $0x1], 0  ;;  %s444_s9 = smov 0   ;;  %s446_s10 = smov 0  }
   0x2   :  { %s448_s11 = smov 0   ;;  %s450_s12 = smov 0  }
   0x3 LB: > { %s463_s13 = sadd.s32 4294967295, %s425_s12   ;;  %s466_s14 = sadd.s32 1, %s425_s12   ;;  %s425_s12 = sphi %s450_s12, %s568_s12   ;;  %s421_s11 = sphi %s448_s11, %s567_s11   ;;  %s417_s10 = sphi %s446_s10, %s566_s10   ;;  %s413_s9 = sphi %s444_s9, %s565_s9  }
   0x4   : > { %s19_s15 = ssub.s32 %s425_s12, %s466_s14  ;;  %s22_s16 = sadd.s32 1, %s421_s11 }
   0x5   : > { %p20_p0 = scmp.eq.s32.totalorder %s19_s15, 0  ;;  %p29_p1 = scmp.ne.s32.totalorder %s421_s11, %s417_s10 }
   0x6   : > { %p30_p2 = scmp.eq.s32.totalorder %s425_s12, 0  ;;  %p35_p3 = scmp.ne.s32.totalorder %s417_s10, %s413_s9 }
   0x7   : > { %s476_s17 = scalar_select %p20_p0, %s421_s11, %s22_s16  }
   0x8   : > { %p31_p4 = por %p30_p2, %p29_p1  ;;  %p36_p5 = scmp.eq.s32.totalorder %s463_s13, 0 }
   0x9   : > { %p328_p6 = scmp.lt.s32.totalorder %s425_s12, 2  ;;  %s111_s19 = sand.u32 1, %s421_s11  }
   0xa   : > { %p480_p7 = por %p36_p5, %p35_p3  ;;  %s312_s20 = sshll.u32 %s111_s19, 5 }
   0xb   : > { %s321_s21 = sshll.u32 %s425_s12, 9  ;;  %s115_s25 = scalar_lea.vmem [#allocation2], %s312_s20 }
   0xc   : > { %s560_s18 = scalar_select %p480_p7, 1, 0 }
   0xd   : > { %s489_s24 = scalar_lea.hbm %s556_s0, %s321_s21  ;;  %s123_s26 = sshll.u32 %s115_s25, 4  ;;  %s491_s26 = int_to_ptr.vmem [resolvable:$true] %s123_s26 }
   0xe   : > { %p493_p8 = pnand %p328_p6, %p31_p4  ;;  %s112_s28 = scalar_lea.sflag [#allocation3], %s111_s19 }
   0xf   : > { %s363_s29 = scalar_lea.hbm %s489_s24, 512  ;;  %s368_s4 = scalar_lea.hbm %s556_s0, 1024 }
  0x10   : > { %p364_p11 = scmp.ne.s32.totalorder %s489_s24, %s363_s29  ;;  %p365_p12 = pneg %p493_p8 }
  0x11   : > { %p369_p1 = scmp.lt.s32.totalorder %s489_s24, %s556_s0  ;;  %p370_p2 = scmp.lt.s32.totalorder %s368_s4, %s363_s29 }
  0x12   : > { %p366_p13 = pnand %p365_p12, %p364_p11 }
  0x13   : > { %p371_p3 = por %p370_p2, %p369_p1 }
  0x14   : > { %p367_p0 = pneg %p366_p13 }
  0x16   : > { %p372_p4 = pnand %p371_p3, %p367_p0 }
  0x18   : > { %375 = shalt.err (!%p372_p4)
}
  0x19   : > { %s376_s7 = scalar_lea.vmem %s491_s26, 512  ;;  %s427_s8 = smov [#allocation2]  }
  0x1a   : > { %p377_p5 = scmp.ne.s32.totalorder %s491_s26, %s376_s7  ;;  %s381_s9 = sshll.u32 %s427_s8, 4  ;;  %s382_s9 = int_to_ptr.vmem [resolvable:$false] %s381_s9 }
  0x1b   : > { %s383_s15 = scalar_lea.vmem %s382_s9, 1024  ;;  %p384_p13 = scmp.lt.s32.totalorder %s491_s26, %s382_s9 }
  0x1c   : > { %p379_p6 = pnand %p377_p5, %p365_p12  ;;  %p385_p9 = scmp.lt.s32.totalorder %s383_s15, %s376_s7 }
  0x1e   : > { %p380_p11 = pneg %p379_p6  ;;  %p386_p10 = por %p385_p9, %p384_p13 }
  0x20   : > { %p387_p7 = pnand %p386_p10, %p380_p11 }
  0x22   : > { %390 = shalt.err (!%p387_p7)
}
  0x23   : > { %327 = dma.hbm_to_vmem [thread:$0]  (!%p493_p8), %s489_s24, 512, %s491_s26, %s112_s28  }
  0x24   : > { %p562_p0 = scmp.lt.s32.totalorder %s425_s12, 3  ;;  %p563_p1 = scmp.ge.s32.totalorder %s425_s12, 1 }
  0x26   : > { %p136_p12 = pnand %p563_p1, %p562_p0 }
  0x27   : > { %s141_s16 = sand.u32 (!%p136_p12), 1, %s417_s10   ;;  %p564_p9 = scmp.ne.s32.totalorder (!%p136_p12), %s560_s18, 0 }
  0x28   : > { %139 = sbr.rel (%p136_p12) target bundleno = 331 (0x14b), region = 28  ;;  %s316_s19 = sshll.u32 (!%p136_p12), %s141_s16, 5 }
  0x29   : > { %s142_s20 = scalar_lea.sflag (!%p136_p12), [#allocation3], %s141_s16  ;;  %s145_s21 = scalar_lea.vmem (!%p136_p12), [#allocation2], %s316_s19 }
  0x2d   : > { %408 = dma.done.wait (%p564_p9), %s142_s20, 512  }
  0x2e   : > { %410 = vsyncadd (%p564_p9), %s142_s20, 4294966784  ;;  %p169_p7 = scmp.lt.s32.totalorder %s463_s13, 1  ;;  %v428_v0 = vmov 0   ;;  %v182_v2 = vlaneseq  ;;  %v177_v5 = vld [vmem:[%s145_s21] sm:$0xff]  ;;  %v178_v6 = vld [vmem:[%s145_s21 + $0x8] sm:$0xff]  ;;  %vm197_vm1 = vcmask 949248  }
  0x2f   : > { %362 = vset.pattern.permute.xlu0 %v428_v0  ;;  %v180_v7 = vld [vmem:[%s145_s21 + $0x18] sm:$0xff]  ;;  %v195_v8 = vadd.f32 %v178_v6, %v177_v5  ;;  %v179_v9 = vld [vmem:[%s145_s21 + $0x10] sm:$0xff]  ;;  %vm230_vm7 = vcmask 7168  }
  0x30   : > { %s570_s13 = smov (!%p169_p7, %s463_s13), 1  ;;  %v183_v3 = vand.u32 127, %v182_v2 }
  0x31   : > { %s317_s12 = sshll.u32 %s570_s13, 3  ;;  %v196_v11 = vadd.f32 %v195_v8, %v179_v9 }
  0x32   : > { %s172_s24 = scalar_lea.vmem %s557_s1, %s317_s12  ;;  %v186_v4 = vadd.s32 384, %v183_v3  ;;  %v184_v14 = vadd.s32 128, %v183_v3  ;;  %v185_v15 = vadd.s32 256, %v183_v3  ;;  %s176_s26 = scalar_lea.vmem %s558_s2, %s317_s12 }
  0x33   : > { %v181_v1 = vld [vmem:[%s172_s24] sm:$0xff] }
  0x34   : > { %203 = vperm.xlu0 %362, %v181_v1   ;;  %vm190_vm0 = vcmp.lt.s32.totalorder %v186_v4, 500  ;;  %vm224_vm6 = vcmp.eq.s32.totalorder %v181_v1, 0 }
  0x35   : > { %v194_v10 = vsel %vm190_vm0, %v180_v7, 0.0 }
  0x36   : > { %v198_v12 = vsel %vm197_vm1, %v194_v10, 0.0 }
  0x37   : > { %v199_v13 = vadd.f32 %v198_v12, %v196_v11 }
  0x53   : > { %200 = vadd.xlane.f32.xlu0 %v199_v13 }
  0xaf   : > { %v204_v16 = vpop.permute.xlu0 %203 }
  0xb0   : > { %vm205_vm2 = vcmp.eq.s32.totalorder %v183_v3, %v204_v16  ;;  %vm206_vm3 = vcmp.eq.s32.totalorder %v184_v14, %v204_v16  ;;  %vm207_vm4 = vcmp.eq.s32.totalorder %v185_v15, %v204_v16  ;;  %vm208_vm5 = vcmp.eq.s32.totalorder %v186_v4, %v204_v16 }
  0xb1   : > { %v209_v17 = vsel %vm205_vm2, %v177_v5, 0.0  ;;  %v210_v18 = vsel %vm206_vm3, %v178_v6, 0.0  ;;  %v212_v19 = vsel %vm208_vm5, %v194_v10, 0.0  ;;  %v211_v21 = vsel %vm207_vm4, %v179_v9, 0.0 }
  0xb2   : > { %v213_v20 = vadd.f32 %v210_v18, %v209_v17  ;;  %v215_v23 = vsel %vm197_vm1, %v212_v19, 0.0 }
  0xb4   : > { %v214_v22 = vadd.f32 %v213_v20, %v211_v21 }
  0xb6   : > { %v216_v24 = vadd.f32 %v215_v23, %v214_v22 }
  0xb8   : > { %217 = vadd.xlane.f32.xlu1 %v216_v24 }
  0xdc   : > { %v201_v25 = vpop.xlane.xlu0 %200 }
  0xdd   : > { %v219_v26 = vsub.f32 %v201_v25, %v177_v5 }
  0xdf   : > { %v220_v27 = vmul.f32 0.00020080322, %v219_v26 }
  0xe1   : > { %v221_v28 = vsub.f32 -0.94785243, %v220_v27 }
 0x141   : > { %v218_v29 = vpop.xlane.xlu1 %217 }
 0x142   : > { %v222_v30 = vmul.f32 0.9, %v218_v29  ;;  %v225_v31 = vmul.f32 0.00020080322, %v218_v29 }
 0x144   : > { %v223_v32 = vsub.f32 %v221_v28, %v222_v30  ;;  %v226_v33 = vsub.f32 -0.001709475, %v225_v31 }
 0x146   : > { %v227_v34 = vsel %vm224_vm6, 0.0, %v226_v33 }
 0x147   : > { %v228_v35 = vsub.f32 %v223_v32, %v227_v34 }
 0x149   : > { %v229_v36 = vsel %vm224_vm6, 0.0, %v228_v35 }
 0x14a   : > { %231 = vst.msk [vmem:[%s176_s26] sm:$0xff] %vm230_vm7, %v229_v36 }
 0x14b PF: > { %p12_p8 = scmp.ge.s32.totalorder %s466_s14, 4   ;;  %s565_s9 = smov %s417_s10 }
 0x14c   : > { %s566_s10 = smov %s421_s11  ;;  %s567_s11 = smov %s476_s17 }
 0x14d   : > { %s568_s12 = smov %s466_s14  ;;  %14 = sbr.rel (!%p12_p8) target bundleno = 3 (0x3), region = 71 }
 0x152   :  { %251 = vsyncpa [#allocation3], 1 }
 0x153   :  { %253 = vsyncpa [#allocation3 + $0x1], 1 }

</bundles_post_ra>
